<compile_context>
chip_gen: v7x
topology: tpu7x:2x2x1
jax: 0.10.0
libtpu: 0.0.40
codegen_flags: <defaults>
</compile_context>

<pallas_src>
import math
import jax
import jax.numpy as jnp
from jax import lax
from jax.experimental import pallas as pl
from jax.experimental.pallas import tpu as pltpu


def tfm_kernel(x1_ref, x2_ref, w1_ref, w2_ref, b_ref, g_ref, beta_ref, o_ref):
    # x1_ref / x2_ref: (C_half, TP)   channels on sublanes, pixels on lanes
    # w1_ref / w2_ref: (Cout, C_half) (io dtype; bf16 feeds the MXU natively)
    # b / g / beta:    (Cout, 1)      f32
    # o_ref:           (Cout, TP)     lane-dense output tile (io dtype)
    x1 = x1_ref[...]
    x2 = x2_ref[...]

    # 1x1 conv on concat([x1, x2]) == W1 @ x1 + W2 @ x2 + b   (per-pixel matmul)
    y = (jnp.dot(w1_ref[...], x1, preferred_element_type=jnp.float32)
         + jnp.dot(w2_ref[...], x2, preferred_element_type=jnp.float32)
         + b_ref[...])

    # ConvNeXt channels_first LayerNorm over the channel (sublane) axis:
    # biased variance, eps inside the sqrt, eps = 1e-6.  All f32 in-register.
    u = jnp.mean(y, axis=0, keepdims=True)
    d = y - u
    s = jnp.mean(d * d, axis=0, keepdims=True)
    yn = d * lax.rsqrt(s + 1e-6)
    yn = g_ref[...] * yn + beta_ref[...]

    # Exact (erf) GELU, matching torch.nn.GELU() default.
    out = 0.5 * yn * (1.0 + lax.erf(yn * (1.0 / math.sqrt(2.0))))
    o_ref[...] = out.astype(o_ref.dtype)


def _round_up(x, m):
    return ((x + m - 1) // m) * m


def tfm_forward(x1, x2, conv_w, conv_b, ln_w, ln_b, *, tile_pix=2048):
    """x1, x2: NCHW with int_ch // 2 channels each. Returns NCHW with int_ch // 2 channels.

    Output dtype follows the activation dtype (pass bf16 activations to halve
    HBM traffic); all internal math is f32.
    """
    N, C_half, H, W = x1.shape
    Cin = 2 * C_half          # int_ch
    Cout = conv_w.shape[0]    # int_ch // 2
    P = H * W
    io_dtype = x1.dtype

    # NCHW is already (C, H*W) per image -> zero-copy reshape, no transpose,
    # no concat, and (per review) no jnp.pad / output slice.
    x1f = x1.reshape(N, C_half, P)
    x2f = x2.reshape(N, C_half, P)

    # Pixel (lane) tile: multiple of 128, clamped to the image.
    tp = min(_round_up(tile_pix, 128), _round_up(P, 128))
    n_pix = pl.cdiv(P, tp)
    # v7x has 2 TensorCores: guarantee >= 2 parallel grid blocks when possible.
    if N * n_pix < 2 and P > 128:
        tp = max(128, _round_up(pl.cdiv(P, 2), 128))
        n_pix = pl.cdiv(P, tp)

    # Split the 1x1-conv weight so the concatenated input never materializes:
    #   W @ [x1; x2] = W1 @ x1 + W2 @ x2
    w = conv_w.reshape(Cout, Cin)
    w1 = w[:, :C_half].astype(io_dtype)
    w2 = w[:, C_half:].astype(io_dtype)
    b_col = conv_b.reshape(Cout, 1).astype(jnp.float32)
    g_col = ln_w.reshape(Cout, 1).astype(jnp.float32)
    be_col = ln_b.reshape(Cout, 1).astype(jnp.float32)

    # Explicit VMEM budget: double-buffered activation/output blocks plus the
    # f32 LN/GELU intermediates; clamp to 32-48 MiB (fits v7x's 64 MiB, raises
    # v5e's 16 MiB default scoped limit).
    io_bytes = jnp.dtype(io_dtype).itemsize
    vmem_est = (2 * 2 * C_half * tp * io_bytes      # x1 + x2, 2-deep pipeline
                + 2 * Cout * tp * io_bytes          # output, 2-deep pipeline
                + 4 * Cout * tp * 4                 # f32 y/d/yn/out temporaries
                + 2 * Cout * C_half * io_bytes)     # resident weights
    vmem_limit = int(min(48 * 1024 * 1024, max(32 * 1024 * 1024, 2 * vmem_est)))

    grid = (N, n_pix)

    out = pl.pallas_call(
        tfm_kernel,
        out_shape=jax.ShapeDtypeStruct((N, Cout, P), io_dtype),
        grid_spec=pltpu.PrefetchScalarGridSpec(
            num_scalar_prefetch=0,
            grid=grid,
            in_specs=[
                pl.BlockSpec((None, C_half, tp), lambda n, p: (n, 0, p)),
                pl.BlockSpec((None, C_half, tp), lambda n, p: (n, 0, p)),
                pl.BlockSpec((Cout, C_half), lambda n, p: (0, 0)),
                pl.BlockSpec((Cout, C_half), lambda n, p: (0, 0)),
                pl.BlockSpec((Cout, 1), lambda n, p: (0, 0)),
                pl.BlockSpec((Cout, 1), lambda n, p: (0, 0)),
                pl.BlockSpec((Cout, 1), lambda n, p: (0, 0)),
            ],
            out_specs=pl.BlockSpec((None, Cout, tp), lambda n, p: (n, 0, p)),
        ),
        compiler_params=pltpu.CompilerParams(
            dimension_semantics=("parallel", "parallel"),
            vmem_limit_bytes=vmem_limit),
    )(x1f, x2f, w1, w2, b_col, g_col, be_col)

    return out.reshape(N, Cout, H, W)


def _reference(x1, x2, conv_w, conv_b, ln_w, ln_b):
    """Pure-JAX reference mirroring the PyTorch TFM forward (for sanity check)."""
    x = jnp.concatenate([x1, x2], axis=1)                         # (N, Cin, H, W)
    # 1x1 conv
    y = jnp.einsum("nchw,oc->nohw", x, conv_w.reshape(conv_w.shape[0], -1))
    y = y + conv_b[None, :, None, None]
    # channels_first LayerNorm
    u = jnp.mean(y, axis=1, keepdims=True)
    s = jnp.mean((y - u) ** 2, axis=1, keepdims=True)
    yn = (y - u) / jnp.sqrt(s + 1e-6)
    yn = ln_w[None, :, None, None] * yn + ln_b[None, :, None, None]
    return 0.5 * yn * (1.0 + lax.erf(yn / jnp.sqrt(2.0)))


if __name__ == "__main__":
    key = jax.random.PRNGKey(0)
    k1, k2, k3, k4 = jax.random.split(key, 4)

    # int_ch = 8  =>  x1, x2 each have int_ch // 2 = 4 channels
    N, C_half, H, W = 2, 4, 16, 16
    int_ch = 2 * C_half           # conv in-channels
    out_ch = int_ch // 2          # conv out-channels

    x1 = jax.random.normal(k1, (N, C_half, H, W), dtype=jnp.float32)
    x2 = jax.random.normal(k2, (N, C_half, H, W), dtype=jnp.float32)

    # Deterministic parameter init (synthetic, not a checkpoint load)
    conv_w = jax.random.normal(k3, (out_ch, int_ch, 1, 1), dtype=jnp.float32) * 0.1
    conv_b = jax.random.normal(k4, (out_ch,), dtype=jnp.float32) * 0.1
    ln_w = jnp.ones((out_ch,), dtype=jnp.float32)
    ln_b = jnp.zeros((out_ch,), dtype=jnp.float32)

    ref = _reference(x1, x2, conv_w, conv_b, ln_w, ln_b)

    # f32 I/O path: tight check vs reference.
    out = tfm_forward(x1, x2, conv_w, conv_b, ln_w, ln_b)
    out = jax.block_until_ready(out)
    assert out.shape == (N, out_ch, H, W), out.shape
    assert jnp.allclose(out, ref, atol=1e-4, rtol=1e-4), "f32 mismatch vs reference"

    # bf16 I/O path (halved HBM traffic; compute stays f32): loose check.
    out_bf16 = tfm_forward(x1.astype(jnp.bfloat16), x2.astype(jnp.bfloat16),
                           conv_w, conv_b, ln_w, ln_b)
    out_bf16 = jax.block_until_ready(out_bf16)
    assert out_bf16.dtype == jnp.bfloat16, out_bf16.dtype
    assert out_bf16.shape == (N, out_ch, H, W), out_bf16.shape
    assert jnp.allclose(out_bf16.astype(jnp.float32), ref, atol=1e-1, rtol=1e-1), \
        "bf16 mismatch vs reference"

    print("KERNEL_OK")
</pallas_src>

<mosaic_0001>
module attributes {stable_mosaic.version = 11 : i64} {
  func.func @tfm_kernel(%arg0: i32, %arg1: i32, %arg2: memref<1x4x256xf32, #tpu.memory_space<vmem>>, %arg3: memref<1x4x256xf32, #tpu.memory_space<vmem>>, %arg4: memref<4x4xf32, #tpu.memory_space<vmem>>, %arg5: memref<4x4xf32, #tpu.memory_space<vmem>>, %arg6: memref<4x1xf32, #tpu.memory_space<vmem>>, %arg7: memref<4x1xf32, #tpu.memory_space<vmem>>, %arg8: memref<4x1xf32, #tpu.memory_space<vmem>>, %arg9: memref<1x4x256xf32, #tpu.memory_space<vmem>>) attributes {dimension_semantics = [#tpu.dimension_semantics<parallel>, #tpu.dimension_semantics<parallel>], iteration_bounds = array<i64: 2, 1>, scalar_prefetch = 0 : i64, scratch_operands = 0 : i64, tpu.core_type = #tpu.core_type<tc>, window_params = [{transform_indices = @transform_0, window_bounds = array<i64: 1, 4, 256>}, {transform_indices = @transform_1, window_bounds = array<i64: 1, 4, 256>}, {pipeline_mode = #tpu.pipeline_mode<synchronous>, transform_indices = @transform_2, window_bounds = array<i64: 4, 4>}, {pipeline_mode = #tpu.pipeline_mode<synchronous>, transform_indices = @transform_3, window_bounds = array<i64: 4, 4>}, {pipeline_mode = #tpu.pipeline_mode<synchronous>, transform_indices = @transform_4, window_bounds = array<i64: 4, 1>}, {pipeline_mode = #tpu.pipeline_mode<synchronous>, transform_indices = @transform_5, window_bounds = array<i64: 4, 1>}, {pipeline_mode = #tpu.pipeline_mode<synchronous>, transform_indices = @transform_6, window_bounds = array<i64: 4, 1>}, {transform_indices = @transform_7, window_bounds = array<i64: 1, 4, 256>}]} {
    %c0 = arith.constant 0 : index
    %c0_0 = arith.constant 0 : index
    %c0_1 = arith.constant 0 : index
    %0 = vector.load %arg2[%c0, %c0_0, %c0_1] : memref<1x4x256xf32, #tpu.memory_space<vmem>>, vector<1x4x256xf32>
    %1 = vector.shape_cast %0 : vector<1x4x256xf32> to vector<4x256xf32>
    %c0_2 = arith.constant 0 : index
    %c0_3 = arith.constant 0 : index
    %c0_4 = arith.constant 0 : index
    %2 = vector.load %arg3[%c0_2, %c0_3, %c0_4] : memref<1x4x256xf32, #tpu.memory_space<vmem>>, vector<1x4x256xf32>
    %3 = vector.shape_cast %2 : vector<1x4x256xf32> to vector<4x256xf32>
    %c0_5 = arith.constant 0 : index
    %c0_6 = arith.constant 0 : index
    %4 = vector.load %arg4[%c0_5, %c0_6] : memref<4x4xf32, #tpu.memory_space<vmem>>, vector<4x4xf32>
    %cst = arith.constant dense<0.000000e+00> : vector<4x256xf32>
    %5 = tpu.matmul %4, %1, %cst {dimension_numbers = #tpu.dot_dimension_numbers<[1], [0], [0], [1], [0, 0, 1, 1], [], []>} : vector<4x4xf32>, vector<4x256xf32>, vector<4x256xf32> -> vector<4x256xf32>
    %c0_7 = arith.constant 0 : index
    %c0_8 = arith.constant 0 : index
    %6 = vector.load %arg5[%c0_7, %c0_8] : memref<4x4xf32, #tpu.memory_space<vmem>>, vector<4x4xf32>
    %cst_9 = arith.constant dense<0.000000e+00> : vector<4x256xf32>
    %7 = tpu.matmul %6, %3, %cst_9 {dimension_numbers = #tpu.dot_dimension_numbers<[1], [0], [0], [1], [0, 0, 1, 1], [], []>} : vector<4x4xf32>, vector<4x256xf32>, vector<4x256xf32> -> vector<4x256xf32>
    %8 = arith.addf %5, %7 : vector<4x256xf32>
    %c0_10 = arith.constant 0 : index
    %c0_11 = arith.constant 0 : index
    %9 = vector.load %arg6[%c0_10, %c0_11] : memref<4x1xf32, #tpu.memory_space<vmem>>, vector<4x1xf32>
    %10 = vector.broadcast %9 : vector<4x1xf32> to vector<4x256xf32>
    %11 = arith.addf %8, %10 : vector<4x256xf32>
    %cst_12 = arith.constant dense<0.000000e+00> : vector<256xf32>
    %12 = vector.multi_reduction <add>, %11, %cst_12 [0] : vector<4x256xf32> to vector<256xf32>
    %13 = vector.shape_cast %12 : vector<256xf32> to vector<1x256xf32>
    %cst_13 = arith.constant 4.000000e+00 : f32
    %14 = vector.broadcast %cst_13 : f32 to vector<1x256xf32>
    %15 = arith.divf %13, %14 : vector<1x256xf32>
    %16 = vector.broadcast %15 : vector<1x256xf32> to vector<4x256xf32>
    %17 = arith.subf %11, %16 : vector<4x256xf32>
    %18 = arith.mulf %17, %17 : vector<4x256xf32>
    %cst_14 = arith.constant dense<0.000000e+00> : vector<256xf32>
    %19 = vector.multi_reduction <add>, %18, %cst_14 [0] : vector<4x256xf32> to vector<256xf32>
    %20 = vector.shape_cast %19 : vector<256xf32> to vector<1x256xf32>
    %cst_15 = arith.constant 4.000000e+00 : f32
    %21 = vector.broadcast %cst_15 : f32 to vector<1x256xf32>
    %22 = arith.divf %20, %21 : vector<1x256xf32>
    %cst_16 = arith.constant 9.99999997E-7 : f32
    %23 = vector.broadcast %cst_16 : f32 to vector<1x256xf32>
    %24 = arith.addf %22, %23 : vector<1x256xf32>
    %25 = math.rsqrt %24 : vector<1x256xf32>
    %26 = vector.broadcast %25 : vector<1x256xf32> to vector<4x256xf32>
    %27 = arith.mulf %17, %26 : vector<4x256xf32>
    %c0_17 = arith.constant 0 : index
    %c0_18 = arith.constant 0 : index
    %28 = vector.load %arg7[%c0_17, %c0_18] : memref<4x1xf32, #tpu.memory_space<vmem>>, vector<4x1xf32>
    %29 = vector.broadcast %28 : vector<4x1xf32> to vector<4x256xf32>
    %30 = arith.mulf %29, %27 : vector<4x256xf32>
    %c0_19 = arith.constant 0 : index
    %c0_20 = arith.constant 0 : index
    %31 = vector.load %arg8[%c0_19, %c0_20] : memref<4x1xf32, #tpu.memory_space<vmem>>, vector<4x1xf32>
    %32 = vector.broadcast %31 : vector<4x1xf32> to vector<4x256xf32>
    %33 = arith.addf %30, %32 : vector<4x256xf32>
    %cst_21 = arith.constant 5.000000e-01 : f32
    %34 = vector.broadcast %cst_21 : f32 to vector<4x256xf32>
    %35 = arith.mulf %34, %33 : vector<4x256xf32>
    %cst_22 = arith.constant 0.707106769 : f32
    %36 = vector.broadcast %cst_22 : f32 to vector<4x256xf32>
    %37 = arith.mulf %33, %36 : vector<4x256xf32>
    %38 = math.erf %37 : vector<4x256xf32>
    %cst_23 = arith.constant 1.000000e+00 : f32
    %39 = vector.broadcast %cst_23 : f32 to vector<4x256xf32>
    %40 = arith.addf %39, %38 : vector<4x256xf32>
    %41 = arith.mulf %35, %40 : vector<4x256xf32>
    %c0_24 = arith.constant 0 : index
    %c0_25 = arith.constant 0 : index
    %c0_26 = arith.constant 0 : index
    %42 = vector.load %arg9[%c0_24, %c0_25, %c0_26] : memref<1x4x256xf32, #tpu.memory_space<vmem>>, vector<1x4x256xf32>
    %43 = vector.shape_cast %42 : vector<1x4x256xf32> to vector<4x256xf32>
    %44 = vector.shape_cast %41 : vector<4x256xf32> to vector<1x4x256xf32>
    tpu.vector_store %arg9[%c0_24, %c0_25, %c0_26], %44 {strides = array<i32>} : memref<1x4x256xf32, #tpu.memory_space<vmem>>, vector<1x4x256xf32>,
    return
  }
  func.func @transform_0(%arg0: i32, %arg1: i32) -> (i32, i32, i32) {
    %c0_i32 = arith.constant 0 : i32
    %c0_i32_0 = arith.constant 0 : i32
    return %arg0, %c0_i32, %arg1 : i32, i32, i32
  }
  func.func @transform_1(%arg0: i32, %arg1: i32) -> (i32, i32, i32) {
    %c0_i32 = arith.constant 0 : i32
    %c0_i32_0 = arith.constant 0 : i32
    return %arg0, %c0_i32, %arg1 : i32, i32, i32
  }
  func.func @transform_2(%arg0: i32, %arg1: i32) -> (i32, i32) {
    %c0_i32 = arith.constant 0 : i32
    %c0_i32_0 = arith.constant 0 : i32
    %c0_i32_1 = arith.constant 0 : i32
    return %c0_i32, %c0_i32_0 : i32, i32
  }
  func.func @transform_3(%arg0: i32, %arg1: i32) -> (i32, i32) {
    %c0_i32 = arith.constant 0 : i32
    %c0_i32_0 = arith.constant 0 : i32
    %c0_i32_1 = arith.constant 0 : i32
    return %c0_i32, %c0_i32_0 : i32, i32
  }
  func.func @transform_4(%arg0: i32, %arg1: i32) -> (i32, i32) {
    %c0_i32 = arith.constant 0 : i32
    %c0_i32_0 = arith.constant 0 : i32
    %c0_i32_1 = arith.constant 0 : i32
    return %c0_i32, %c0_i32_0 : i32, i32
  }
  func.func @transform_5(%arg0: i32, %arg1: i32) -> (i32, i32) {
    %c0_i32 = arith.constant 0 : i32
    %c0_i32_0 = arith.constant 0 : i32
    %c0_i32_1 = arith.constant 0 : i32
    return %c0_i32, %c0_i32_0 : i32, i32
  }
  func.func @transform_6(%arg0: i32, %arg1: i32) -> (i32, i32) {
    %c0_i32 = arith.constant 0 : i32
    %c0_i32_0 = arith.constant 0 : i32
    %c0_i32_1 = arith.constant 0 : i32
    return %c0_i32, %c0_i32_0 : i32, i32
  }
  func.func @transform_7(%arg0: i32, %arg1: i32) -> (i32, i32, i32) {
    %c0_i32 = arith.constant 0 : i32
    %c0_i32_0 = arith.constant 0 : i32
    return %arg0, %c0_i32, %arg1 : i32, i32, i32
  }
}

</mosaic_0001>

<bundles_post_ra>
// kernel: tpu_custom_call.1
= control target key start
LH: loop header
LB: loop body
LE: loop exit
PB: predicated region body
PF: predicated region fallthrough
CT: control target
= control target key end

     0   :  { %12 = vsyncpa [#allocation3], 0  ;;  %s1184_s0 = inlined_call_operand.hbm [shape: f32[2,4,256], index: 0, kind: input, shape index: {}]   ;;  %s1185_s1 = inlined_call_operand.vmem [shape: f32[2,4,256], index: 1, kind: input, shape index: {}]   ;;  %s1186_s2 = inlined_call_operand.vmem [shape: f32[4,4], index: 2, kind: input, shape index: {}]   ;;  %s1187_s3 = inlined_call_operand.vmem [shape: f32[4,4], index: 3, kind: input, shape index: {}]   ;;  %s1188_s4 = inlined_call_operand.vmem [shape: f32[4,1], index: 4, kind: input, shape index: {}]   ;;  %s1189_s5 = inlined_call_operand.vmem [shape: f32[4,1], index: 5, kind: input, shape index: {}]   ;;  %s1190_s6 = inlined_call_operand.vmem [shape: f32[4,1], index: 6, kind: input, shape index: {}]   ;;  %s1191_s7 = inlined_call_operand.hbm [shape: f32[2,4,256], index: 7, kind: output, shape index: {}]  }
   0x1   :  { %14 = vsyncpa [#allocation3 + $0x1], 0 }
   0x2   :  { %15 = vsyncpa [#allocation4], 0 }
   0x3   :  { %17 = vsyncpa [#allocation4 + $0x1], 0  ;;  %s980_s24 = smov 0   ;;  %s982_s25 = smov 0  }
   0x4   :  { %s984_s26 = smov 0   ;;  %s986_s27 = smov 0  }
   0x5   :  { %s988_s28 = smov 0   ;;  %s990_s29 = smov 0  }
   0x6 LB: > { %s718_s30 = sadd.s32 4294967295, %s934_s29   ;;  %s719_s8 = sadd.s32 4294967294, %s934_s29   ;;  %s934_s29 = sphi %s990_s29, %s23_s29   ;;  %s930_s28 = sphi %s988_s28, %s1207_s28   ;;  %s926_s27 = sphi %s986_s27, %s1206_s27   ;;  %s922_s26 = sphi %s984_s26, %s1205_s26   ;;  %s918_s25 = sphi %s982_s25, %s1204_s25   ;;  %s914_s24 = sphi %s980_s24, %s1203_s24  }
   0x7   : > { %s35_s9 = sadd.s32 1, %s930_s28  ;;  %s44_s10 = sadd.s32 1, %s922_s26 }
   0x8   : > { %p37_p0 = scmp.ge.s32.totalorder %s35_s9, 2  ;;  %p51_p1 = scmp.ne.s32.totalorder %s922_s26, %s918_s25 }
   0x9   : > { %p52_p2 = scmp.eq.s32.totalorder %s934_s29, 0  ;;  %p57_p3 = scmp.ne.s32.totalorder %s918_s25, %s914_s24 }
   0xa   : > { %s1209_s9 = smov (%p37_p0, %s35_s9), 0  ;;  %p58_p5 = scmp.eq.s32.totalorder %s718_s30, 0 }
   0xb   : > { %p1021_p4 = por %p52_p2, %p51_p1  ;;  %s39_s12 = ssub.s32 %s930_s28, %s1209_s9 }
   0xc   : > { %p216_p6 = scmp.eq.s32.totalorder %s718_s30, 1  ;;  %p42_p7 = scmp.eq.s32.totalorder %s39_s12, 0 }
   0xd   : > { %p1027_p8 = por %p58_p5, %p57_p3  ;;  %p222_p10 = scmp.eq.s32.totalorder %s719_s8, 1 }
   0xe   : > { %p1031_p9 = por %p216_p6, %p51_p1  ;;  %p758_p13 = scmp.lt.s32.totalorder %s934_s29, 2 }
   0xf   : > { %s1036_s15 = scalar_select %p42_p7, %s922_s26, %s44_s10  }
  0x10   : > { %s1195_s14 = scalar_select %p1031_p9, 1, 0 }
  0x11   : > { %p1038_p11 = por %p222_p10, %p57_p3  ;;  %s257_s17 = sand.u32 1, %s922_s26  }
  0x12   : > { %s722_s18 = sshll.u32 %s257_s17, 3  ;;  %s741_s19 = sshll.u32 %s930_s28, 7 }
  0x13   : > { %s1196_s16 = scalar_select %p1038_p11, 1, 0 }
  0x14   : > { %s1049_s22 = scalar_lea.hbm %s1184_s0, %s741_s19  ;;  %s261_s23 = scalar_lea.vmem [#allocation2], %s722_s18 }
  0x15   : > { %s271_s30 = sshll.u32 %s261_s23, 4  ;;  %p1055_p0 = pnand %p758_p13, %p1021_p4  ;;  %s1051_s30 = int_to_ptr.vmem [resolvable:$true] %s271_s30 }
  0x16   : > { %s258_s10 = scalar_lea.sflag [#allocation3], %s257_s17  ;;  %s822_s12 = scalar_lea.hbm %s1049_s22, 128 }
  0x17   : > { %p823_p3 = scmp.ne.s32.totalorder %s1049_s22, %s822_s12  ;;  %p824_p5 = pneg %p1055_p0 }
  0x18   : > { %s827_s11 = scalar_lea.hbm %s1184_s0, 256  ;;  %p828_p4 = scmp.lt.u32.totalorder %s1049_s22, %s1184_s0 }
  0x19   : > { %p825_p6 = pnand %p824_p5, %p823_p3  ;;  %p829_p10 = scmp.lt.u32.totalorder %s827_s11, %s822_s12 }
  0x1a   : > { %p831_p12 = scmp.lt.u32.totalorder %s822_s12, %s1049_s22 }
  0x1b   : > { %p826_p7 = pneg %p825_p6  ;;  %p830_p13 = por %p829_p10, %p828_p4 }
  0x1d   : > { %p832_p1 = por %p831_p12, %p830_p13 }
  0x1f   : > { %p833_p2 = pnand %p832_p1, %p826_p7 }
  0x21   : > { %836 = shalt.err (!%p833_p2)
}
  0x22   : > { %s837_s17 = scalar_lea.vmem %s1051_s30, 128  ;;  %s936_s23 = smov [#allocation2]  }
  0x23   : > { %p838_p3 = scmp.ne.s32.totalorder %s1051_s30, %s837_s17  ;;  %s842_s18 = sshll.u32 %s936_s23, 4  ;;  %s843_s18 = int_to_ptr.vmem [resolvable:$false] %s842_s18 }
  0x24   : > { %s844_s19 = scalar_lea.vmem %s843_s18, 256  ;;  %p845_p9 = scmp.lt.s32.totalorder %s1051_s30, %s843_s18 }
  0x25   : > { %p840_p6 = pnand %p838_p3, %p824_p5  ;;  %p846_p4 = scmp.lt.s32.totalorder %s844_s19, %s837_s17 }
  0x27   : > { %p841_p11 = pneg %p840_p6  ;;  %p847_p10 = por %p846_p4, %p845_p9 }
  0x29   : > { %p848_p12 = pnand %p847_p10, %p841_p11 }
  0x2b   : > { %851 = shalt.err (!%p848_p12)
}
  0x2c   : > { %753 = dma.hbm_to_vmem [thread:$0]  (!%p1055_p0), %s1049_s22, 128, %s1051_s30, %s258_s10  }
  0x2d   : > { %p1198_p1 = scmp.lt.s32.totalorder %s934_s29, 3  ;;  %p1199_p2 = scmp.ge.s32.totalorder %s934_s29, 1 }
  0x2f   : > { %p290_p5 = pnand %p1199_p2, %p1198_p1 }
  0x30   : > { %s1091_s12 = sand.u32 (!%p290_p5), 1, %s918_s25  }
  0x31   : > { %293 = sbr.rel (%p290_p5) target bundleno = 371 (0x173), region = 48  ;;  %s726_s11 = sshll.u32 (!%p290_p5), %s1091_s12, 3 }
  0x32   : > { %s296_s20 = scalar_lea.sflag (!%p290_p5), [#allocation3], %s1091_s12  ;;  %s299_s8 = scalar_lea.vmem (!%p290_p5), [#allocation2], %s726_s11 }
  0x38   : > { %905 = dma.done.wait (%p1027_p8), %s296_s20, 128  }
  0x39   : > { %907 = vsyncadd (%p1027_p8), %s296_s20, 4294967168  ;;  %p341_p9 = scmp.lt.s32.totalorder %s926_s27, 1  ;;  %v937_v0 = vmov 0.0   ;;  %v938_v1 = vmov 0   ;;  %vm361_vm0 = vcmask 1043456   ;;  %v351_v3 = vld [vmem:[%s299_s8] sm:$0xff] }
  0x3a   : > { %430 = vmatprep.mubr.f32.mxu1 %v937_v0  ;;  %510 = vmatprep.mubr.f32.mxu0 %v937_v0  ;;  %v438_v5 = vcombine.high %v351_v3, %v351_v3  ;;  %v517_v6 = vld [vmem:[%s1188_s4] sm:$0xf]  ;;  %vm357_vm1 = vcmask 31744   ;;  %s338_s13 = scalar_lea.vmem [#allocation5], %s726_s11  ;;  %p1200_p11 = scmp.ne.s32.totalorder %s1195_s14, 0 }
  0x3b   : > { %s342_s22 = scalar_select %p341_p9, %s926_s27, 1  ;;  %810 = vset.pattern.permute.xlu0 %v938_v1  ;;  %811 = vset.pattern.permute.xlu1 %v938_v1  ;;  %v354_v7 = vld [vmem:[%s1187_s3] sm:$0xf] }
  0x3c   : > { %v353_v8 = vld [vmem:[%s1186_s2] sm:$0xf]  ;;  %520 = vperm.xlu0 %810, %v517_v6   ;;  %733 = vmatprep.subr.msk.mxu0 %vm361_vm0, %v438_v5  ;;  %s616_s23 = sshll.u32 %s338_s13, 4  ;;  %s1137_s23 = int_to_ptr.vmem [resolvable:$true] %s616_s23 }
  0x3d   : > { %s742_s30 = sshll.u32 %s342_s22, 3  ;;  %v568_v9 = vld [vmem:[%s1189_s5] sm:$0xf]  ;;  %734 = vmatpush1.msk.msra.mxu0 %vm361_vm0, %v351_v3  ;;  %s600_s22 = scalar_lea.sflag [#allocation4], %s1091_s12 }
  0x3e   : > { %s348_s17 = scalar_lea.vmem %s1185_s1, %s742_s30  ;;  %v576_v10 = vld [vmem:[%s1190_s6] sm:$0xf]  ;;  %735 = vmatmul.mubr.msk.f32.vlgmr.msra.gmra.mrb[0].mxu0 %vm357_vm1, %v353_v8  ;;  %s852_s8 = scalar_lea.vmem %s1137_s23, 128 }
  0x3f   : > { %v352_v2 = vld [vmem:[%s348_s17] sm:$0xff]  ;;  %579 = vperm.xlu1 %811, %v576_v10   ;;  %s743_s17 = sshll.u32 %s926_s27, 7  ;;  %p853_p8 = scmp.ne.s32.totalorder %s1137_s23, %s852_s8 }
  0x40   : > { %v356_v4 = vcombine.high %v352_v2, %v352_v2  ;;  %571 = vperm.xlu0 %810, %v568_v9   ;;  %s1135_s20 = scalar_lea.hbm %s1191_s7, %s743_s17  ;;  %s939_s27 = smov [#allocation5]  }
  0x41   : > { %p854_p0 = pnand %p853_p8, %p1200_p11  ;;  %s856_s11 = sshll.u32 %s939_s27, 4  ;;  %s857_s11 = int_to_ptr.vmem [resolvable:$false] %s856_s11 }
  0x42   : > { %730 = vmatprep.subr.msk.mxu1 %vm361_vm0, %v356_v4  ;;  %s858_s30 = scalar_lea.vmem %s857_s11, 256  ;;  %p859_p13 = scmp.lt.s32.totalorder %s1137_s23, %s857_s11 }
  0x43   : > { %731 = vmatpush1.msk.msra.mxu1 %vm361_vm0, %v352_v2  ;;  %p855_p7 = pneg %p854_p0  ;;  %p860_p3 = scmp.lt.s32.totalorder %s858_s30, %s852_s8 }
  0x44   : > { %732 = vmatmul.mubr.msk.f32.vlgmr.msra.gmra.mrb[0].mxu1 %vm357_vm1, %v354_v7 }
  0x45   : > { %p861_p6 = por %p860_p3, %p859_p13 }
  0x47   : > { %p862_p4 = pnand %p861_p6, %p855_p7 }
  0xbb   : > { %v521_v16 = vpop.permute.xlu0 %520 }
  0xbe   : > { %v580_v63 = vpop.permute.xlu1 %579 }
  0xbf   : > { %v572_v61 = vpop.permute.xlu0 %571 }
 0x111   : > { %v512_v12 = vpop.f32.mrb[0].mxu0 }
 0x112   : > { %v514_v15 = vpop.f32.mrb[1].mxu0 }
 0x117   : > { %v432_v11 = vpop.f32.mrb[0].mxu1 }
 0x118   : > { %v513_v13 = vadd.f32 %v512_v12, %v432_v11  ;;  %v434_v14 = vpop.f32.mrb[1].mxu1 }
 0x119   : > { %v515_v17 = vadd.f32 %v514_v15, %v434_v14 }
 0x11a   : > { %v523_v18 = vadd.f32 %v521_v16, %v513_v13 }
 0x11b   : > { %v524_v19 = vadd.f32 %v521_v16, %v515_v17 }
 0x11c   : > { %v525_v20 = vsel %vm361_vm0, %v523_v18, 0.0 }
 0x11d   : > { %v526_v21 = vrot.slane %v525_v20, 4  ;;  %v532_v22 = vsel %vm361_vm0, %v524_v19, 0.0 }
 0x11e   : > { %v533_v23 = vrot.slane %v532_v22, 4 }
 0x11f   : > { %v527_v24 = vadd.f32 %v526_v21, %v525_v20 }
 0x120   : > { %v534_v25 = vadd.f32 %v533_v23, %v532_v22 }
 0x121   : > { %v528_v26 = vrot.slane %v527_v24, 2 }
 0x122   : > { %v535_v27 = vrot.slane %v534_v25, 2 }
 0x123   : > { %v529_v28 = vadd.f32 %v528_v26, %v527_v24 }
 0x124   : > { %v536_v29 = vadd.f32 %v535_v27, %v534_v25 }
 0x125   : > { %v530_v30 = vrot.slane %v529_v28, 1 }
 0x126   : > { %v537_v31 = vrot.slane %v536_v29, 1 }
 0x127   : > { %v531_v32 = vadd.f32 %v530_v30, %v529_v28 }
 0x128   : > { %v538_v33 = vadd.f32 %v537_v31, %v536_v29 }
 0x129   : > { %v540_v34 = vmul.f32 0.25, %v531_v32 }
 0x12a   : > { %v541_v35 = vmul.f32 0.25, %v538_v33 }
 0x12b   : > { %v542_v36 = vsub.f32 %v523_v18, %v540_v34 }
 0x12c   : > { %v543_v37 = vsub.f32 %v524_v19, %v541_v35 }
 0x12d   : > { %v544_v38 = vmul.f32 %v542_v36, %v542_v36 }
 0x12e   : > { %v545_v39 = vmul.f32 %v543_v37, %v543_v37 }
 0x12f   : > { %v546_v40 = vsel %vm361_vm0, %v544_v38, 0.0 }
 0x130   : > { %v547_v41 = vrot.slane %v546_v40, 4  ;;  %v553_v42 = vsel %vm361_vm0, %v545_v39, 0.0 }
 0x131   : > { %v554_v43 = vrot.slane %v553_v42, 4 }
 0x132   : > { %v548_v44 = vadd.f32 %v547_v41, %v546_v40 }
 0x133   : > { %v555_v45 = vadd.f32 %v554_v43, %v553_v42 }
 0x134   : > { %v549_v46 = vrot.slane %v548_v44, 2 }
 0x135   : > { %v556_v47 = vrot.slane %v555_v45, 2 }
 0x136   : > { %v550_v48 = vadd.f32 %v549_v46, %v548_v44 }
 0x137   : > { %v557_v49 = vadd.f32 %v556_v47, %v555_v45 }
 0x138   : > { %v551_v50 = vrot.slane %v550_v48, 1 }
 0x139   : > { %v558_v51 = vrot.slane %v557_v49, 1 }
 0x13a   : > { %v552_v52 = vadd.f32 %v551_v50, %v550_v48 }
 0x13b   : > { %v559_v53 = vadd.f32 %v558_v51, %v557_v49 }
 0x13c   : > { %v560_v54 = vmul.f32 0.25, %v552_v52 }
 0x13d   : > { %v561_v55 = vmul.f32 0.25, %v559_v53 }
 0x13e   : > { %v562_v56 = vadd.f32 1e-06, %v560_v54 }
 0x13f   : > { %v563_v57 = vadd.f32 1e-06, %v561_v55 }
 0x140   : > { %814 = vrsqrt.f32 %v562_v56 }
 0x141   : > { %816 = vrsqrt.f32 %v563_v57 }
 0x14a   : > { %v815_v58 = vpop.eup %814 }
 0x14b   : > { %v817_v59 = vpop.eup %816  ;;  %v566_v60 = vmul.f32 %v815_v58, %v542_v36 }
 0x14c   : > { %v567_v62 = vmul.f32 %v817_v59, %v543_v37 }
 0x14d   : > { %v574_v0 = vmul.f32 %v572_v61, %v566_v60 }
 0x14e   : > { %v575_v1 = vmul.f32 %v572_v61, %v567_v62 }
 0x14f   : > { %v582_v2 = vadd.f32 %v580_v63, %v574_v0 }
 0x150   : > { %v583_v3 = vadd.f32 %v580_v63, %v575_v1 }
 0x151   : > { %v586_v4 = vmul.f32 0.70710677, %v582_v2  ;;  %v584_v8 = vmul.f32 0.5, %v582_v2 }
 0x152   : > { %v587_v5 = vmul.f32 0.70710677, %v583_v3  ;;  %v585_v10 = vmul.f32 0.5, %v583_v3 }
 0x153   : > { %818 = verf.f32 %v586_v4 }
 0x154   : > { %820 = verf.f32 %v587_v5 }
 0x15d   : > { %v819_v6 = vpop.eup %818 }
 0x15e   : > { %v821_v7 = vpop.eup %820  ;;  %v590_v9 = vadd.f32 1.0, %v819_v6 }
 0x15f   : > { %v591_v11 = vadd.f32 1.0, %v821_v7 }
 0x160   : > { %v592_v12 = vmul.f32 %v590_v9, %v584_v8 }
 0x161   : > { %v593_v13 = vmul.f32 %v591_v11, %v585_v10 }
 0x163   : > { %v596_v14 = vcombine.low %v592_v12, %v593_v13 }
 0x165   : > { %598 = vst [vmem:[%s338_s13] sm:$0xff] %v596_v14 }
 0x166   : > { %865 = shalt.err (!%p862_p4)
}
 0x167   : > { %s866_s12 = scalar_lea.hbm %s1135_s20, 128  ;;  %s870_s17 = scalar_lea.hbm %s1191_s7, 256 }
 0x168   : > { %p867_p10 = scmp.ne.s32.totalorder %s1135_s20, %s866_s12  ;;  %p871_p2 = scmp.lt.u32.totalorder %s1135_s20, %s1191_s7 }
 0x169   : > { %p872_p5 = scmp.lt.u32.totalorder %s870_s17, %s866_s12  ;;  %p874_p8 = scmp.lt.u32.totalorder %s866_s12, %s1135_s20 }
 0x16a   : > { %p868_p12 = pnand %p867_p10, %p1200_p11 }
 0x16b   : > { %p873_p9 = por %p872_p5, %p871_p2 }
 0x16c   : > { %p869_p1 = pneg %p868_p12 }
 0x16d   : > { %p875_p0 = por %p874_p8, %p873_p9 }
 0x16f   : > { %p876_p7 = pnand %p875_p0, %p869_p1 }
 0x171   : > { %879 = shalt.err (!%p876_p7)
}
 0x172   : > { %748 = dma.vmem_to_hbm [thread:$0]  (%p1200_p11), %s1137_s23, 128, %s1135_s20, %s600_s22  }
 0x173 PF: > { %s628_s19 = sand.u32 1, %s914_s24   ;;  %p1201_p13 = scmp.ne.s32.totalorder %s1196_s16, 0 }
 0x174   : > { %p1202_p3 = scmp.ge.s32.totalorder %s934_s29, 2  ;;  %s629_s8 = scalar_lea.sflag [#allocation4], %s628_s19 }
 0x176   : > { %p755_p6 = pnand %p1202_p3, %p1201_p13 }
 0x178   : > { %909 = dma.done.wait (!%p755_p6), %s629_s8, 128  }
 0x179   : > { %911 = vsyncadd (!%p755_p6), %s629_s8, 4294967168  ;;  %s23_s29 = sadd.s32 1, %s934_s29   ;;  %s1203_s24 = smov %s918_s25 }
 0x17a   : > { %p20_p4 = scmp.ge.s32.totalorder %s23_s29, 4   ;;  %s1204_s25 = smov %s922_s26 }
 0x17b   : > { %s1205_s26 = smov %s1036_s15  ;;  %s1206_s27 = smov %s930_s28 }
 0x17c   : > { %s1207_s28 = smov %s1209_s9  ;;  %22 = sbr.rel (!%p20_p4) target bundleno = 6 (0x6), region = 96 }
 0x183   :  { %634 = vsyncpa [#allocation3], 1 }
 0x184   :  { %636 = vsyncpa [#allocation3 + $0x1], 1 }
 0x185   :  { %637 = vsyncpa [#allocation4], 1 }
 0x186   :  { %639 = vsyncpa [#allocation4 + $0x1], 1 }

</bundles_post_ra>
